<compile_context>
chip_gen: v5e
topology: v5e:2x2
jax: 0.10.0
libtpu: 0.0.40
codegen_flags: <defaults>
</compile_context>

<pallas_src>
import functools

import jax
import jax.numpy as jnp
from jax.experimental import pallas as pl
from jax.experimental.pallas import tpu as pltpu


def _round_up(n: int, m: int) -> int:
    return ((n + m - 1) // m) * m


# ---------------------------------------------------------------------------
# Kernel: pure MXU matmul (trans_b form) + fused f32 row/column scaling.
# ---------------------------------------------------------------------------
def _cosine_kernel(x_ref, w_ref, inv_x_ref, inv_w_ref, o_ref):
    # [TB, D] x [TC, D] -> [TB, TC], contracting the last dim of both
    # operands (no transpose of the weight tile is materialized).
    sim = jax.lax.dot_general(
        x_ref[...], w_ref[...],
        dimension_numbers=(((1,), (1,)), ((), ())),
        preferred_element_type=jnp.float32)
    # Row factor = scale / max(||x_row||, 1e-12)  (scale folded in wrapper),
    # column factor = 1 / max(||w_class||, 1e-12); both f32, applied to the
    # f32 accumulator (no double rounding through bf16).
    o_ref[...] = (sim * inv_x_ref[...] * inv_w_ref[...]).astype(o_ref.dtype)


# ---------------------------------------------------------------------------
# Generation-aware VMEM budget + tile selection.
# ---------------------------------------------------------------------------
def _vmem_budget():
    try:
        cap = int(pltpu.get_tpu_info().vmem_capacity_bytes)
    except Exception:
        cap = 64 * 1024 * 1024  # assume the smallest (v7x-like) part
    if cap >= 96 * 1024 * 1024:            # v5e / v6e: 128 MiB physical
        return 88 * 1024 * 1024, 100 * 1024 * 1024
    return 40 * 1024 * 1024, 48 * 1024 * 1024   # v7x: 64 MiB per TensorCore


def _choose_tiles(B, C, Dp, in_itemsize, out_itemsize, budget_bytes,
                  max_tb=256, max_tc=2048):
    # Batch tile with minimal padding: fewest tiles of size <= max_tb.
    n_b = max(1, -(-B // max_tb))
    TB = min(_round_up(-(-B // n_b), 8), _round_up(B, 8))

    # Class tile: as large as the budget allows; >256 tiles stepped in 256s
    # for the 256x256 MXU, lane-dense (multiple of 128) otherwise.
    TC = min(max_tc, _round_up(C, 128))
    if TC > 256:
        TC = min(max_tc, _round_up(TC, 256))

    def usage(tb, tc):
        return (2 * (tb + tc) * Dp * in_itemsize    # double-buffered x / w tiles
                + 2 * tb * tc * out_itemsize        # double-buffered out tiles
                + 2 * (tb + tc) * 4                 # inv-norm vectors
                + 2 * tb * tc * 4)                  # in-kernel f32 intermediates

    while TC > 128 and usage(TB, TC) > budget_bytes:
        TC = max(128, TC - (256 if TC > 256 else 128))
    while TB > 8 and usage(TB, TC) > budget_bytes:
        TB -= 8
    # TODO(synk): add a K-reduction grid axis for feature dims so large that
    # even (TB=8, TC=128) whole-D tiles exceed the VMEM limit.
    return TB, TC


# ---------------------------------------------------------------------------
# Wrapper.
# ---------------------------------------------------------------------------
@functools.partial(jax.jit, static_argnames=("scale", "mxu_dtype"))
def cosine_classifier(x, weight, scale=30.0, mxu_dtype=None):
    """x: [..., D], weight: [C, D] -> [..., C] == scale * cosine(x, W)."""
    *lead, D = x.shape
    C, Dw = weight.shape
    assert D == Dw, "feature dims must match"
    x2 = x.reshape((-1, D))
    B = x2.shape[0]

    # MXU operand dtype: bf16 for f32 inputs (f32 accumulation), else keep.
    if mxu_dtype is None:
        mxu_dtype = jnp.bfloat16 if x.dtype == jnp.float32 else x.dtype
    mxu_dtype = jnp.dtype(mxu_dtype)
    out_dtype = x.dtype
    in_itemsize = mxu_dtype.itemsize
    out_itemsize = jnp.dtype(out_dtype).itemsize

    # Reciprocal L2 norms in f32 from the *original* (un-rounded) values.
    # max(||v||, 1e-12) == sqrt(max(||v||^2, 1e-24)); classifier scale is
    # folded into the row factor so the kernel does one fused multiply.
    def inv_l2(a):
        a32 = a.astype(jnp.float32)
        ssq = jnp.sum(a32 * a32, axis=-1, keepdims=True)
        return jax.lax.rsqrt(jnp.maximum(ssq, 1e-24))

    inv_x = inv_l2(x2) * jnp.float32(scale)        # [B, 1] f32
    inv_w = inv_l2(weight).reshape((1, C))         # [1, C] f32

    Dp = _round_up(D, 128)
    budget, vmem_limit = _vmem_budget()
    TB, TC = _choose_tiles(B, C, Dp, in_itemsize, out_itemsize, budget)
    Bp = _round_up(B, TB)
    Cp = _round_up(C, TC)

    # Zero padding is exact: zero feature columns change neither norms nor
    # dots; padded rows/classes produce exact zeros and are sliced off.
    # TODO(synk): for a static classifier head, cache the padded/cast weight
    # and inv_w across calls instead of recomputing them per call.
    x_p = jnp.pad(x2.astype(mxu_dtype), ((0, Bp - B), (0, Dp - D)))
    w_p = jnp.pad(weight.astype(mxu_dtype), ((0, Cp - C), (0, Dp - D)))
    inv_x_p = jnp.pad(inv_x, ((0, Bp - B), (0, 0)))
    inv_w_p = jnp.pad(inv_w, ((0, 0), (0, Cp - C)))

    n_c = Cp // TC
    n_b = Bp // TB
    grid = (n_c, n_b)   # class tiles outer, batch tiles inner

    cost = pl.CostEstimate(
        flops=2 * Bp * Cp * Dp + 2 * Bp * Cp,
        transcendentals=0,
        bytes_accessed=(x_p.size * in_itemsize * n_c
                        + w_p.size * in_itemsize
                        + (Bp * n_c + Cp) * 4
                        + Bp * Cp * out_itemsize),
    )

    out_p = pl.pallas_call(
        _cosine_kernel,
        out_shape=jax.ShapeDtypeStruct((Bp, Cp), out_dtype),
        grid_spec=pltpu.PrefetchScalarGridSpec(
            num_scalar_prefetch=0,
            grid=grid,
            in_specs=[
                # x tile: indexed by the inner batch axis only.
                pl.BlockSpec((TB, Dp), lambda c, b: (b, 0)),
                # weight tile: indexed by the outer class axis only (not
                # re-DMA'd across the inner batch loop).
                pl.BlockSpec((TC, Dp), lambda c, b: (c, 0)),
                # scale / max(||x_row||, 1e-12), per batch tile.
                pl.BlockSpec((TB, 1), lambda c, b: (b, 0)),
                # 1 / max(||w_class||, 1e-12), per class tile.
                pl.BlockSpec((1, TC), lambda c, b: (0, c)),
            ],
            out_specs=pl.BlockSpec((TB, TC), lambda c, b: (b, c)),
        ),
        compiler_params=pltpu.CompilerParams(
            # No cross-iteration state -> both axes independent; v7x megacore
            # may shard either axis (v5e/v6e single-TC: no-op).
            dimension_semantics=("parallel", "parallel"),
            vmem_limit_bytes=vmem_limit,
        ),
        cost_estimate=cost,
    )(x_p, w_p, inv_x_p, inv_w_p)

    return out_p[:B, :C].reshape((*lead, C))


# ---------------------------------------------------------------------------
# Reference / init helpers.
# ---------------------------------------------------------------------------
def init_cosine_weight(key, num_classes, feat_dim, dtype=jnp.float32):
    """Deterministic re-implementation of:
       torch.empty(C, D).uniform_(-1, 1).renorm_(2, 0, 1e-5).mul_(1e5)
    """
    w = jax.random.uniform(key, (num_classes, feat_dim), dtype=jnp.float32,
                           minval=-1.0, maxval=1.0)
    norms = jnp.sqrt(jnp.sum(w * w, axis=1, keepdims=True))
    maxnorm = 1e-5
    factor = jnp.where(norms > maxnorm, maxnorm / (norms + 1e-7), 1.0)
    return (w * factor * 1e5).astype(dtype)


def reference_cosine_classifier(x, weight, scale=30.0):
    xn = x / jnp.maximum(jnp.linalg.norm(x, axis=-1, keepdims=True), 1e-12)
    wn = weight / jnp.maximum(jnp.linalg.norm(weight, axis=-1, keepdims=True), 1e-12)
    return (xn @ wn.T) * scale


if __name__ == "__main__":
    key = jax.random.PRNGKey(0)
    k_w, k_x = jax.random.split(key)

    batch = 8
    feat_dim = 32
    num_classes = 16
    scale = 30.0

    weight = init_cosine_weight(k_w, num_classes, feat_dim, dtype=jnp.float32)
    x = jax.random.normal(k_x, (batch, feat_dim), dtype=jnp.float32)

    out = cosine_classifier(x, weight, scale=scale)
    out = jax.block_until_ready(out)

    ref = reference_cosine_classifier(x, weight, scale=scale)
    assert out.shape == (batch, num_classes)
    assert out.dtype == x.dtype
    # Default path uses bf16 MXU multiplicands with f32 accumulation/scaling;
    # tolerance sized for bf16 operand rounding at |logit| <= scale.
    assert jnp.allclose(out, ref, atol=5e-2, rtol=5e-2), "mismatch vs reference"

    print("KERNEL_OK")
</pallas_src>

<mosaic_0001>
module attributes {stable_mosaic.version = 11 : i64} {
  func.func @_cosine_kernel(%arg0: i32, %arg1: i32, %arg2: memref<8x128xbf16, #tpu.memory_space<vmem>>, %arg3: memref<128x128xbf16, #tpu.memory_space<vmem>>, %arg4: memref<8x1xf32, #tpu.memory_space<vmem>>, %arg5: memref<1x128xf32, #tpu.memory_space<vmem>>, %arg6: memref<8x128xf32, #tpu.memory_space<vmem>>) attributes {dimension_semantics = [#tpu.dimension_semantics<parallel>, #tpu.dimension_semantics<parallel>], iteration_bounds = array<i64: 1, 1>, scalar_prefetch = 0 : i64, scratch_operands = 0 : i64, tpu.core_type = #tpu.core_type<tc>, window_params = [{transform_indices = @transform_0, window_bounds = array<i64: 8, 128>}, {transform_indices = @transform_1, window_bounds = array<i64: 128, 128>}, {transform_indices = @transform_2, window_bounds = array<i64: 8, 1>}, {transform_indices = @transform_3, window_bounds = array<i64: 1, 128>}, {transform_indices = @transform_4, window_bounds = array<i64: 8, 128>}]} {
    %c0 = arith.constant 0 : index
    %c0_0 = arith.constant 0 : index
    %0 = vector.load %arg2[%c0, %c0_0] : memref<8x128xbf16, #tpu.memory_space<vmem>>, vector<8x128xbf16>
    %c0_1 = arith.constant 0 : index
    %c0_2 = arith.constant 0 : index
    %1 = vector.load %arg3[%c0_1, %c0_2] : memref<128x128xbf16, #tpu.memory_space<vmem>>, vector<128x128xbf16>
    %cst = arith.constant dense<0.000000e+00> : vector<8x128xf32>
    %2 = tpu.matmul %0, %1, %cst {dimension_numbers = #tpu.dot_dimension_numbers<[1], [1], [0], [0], [0, 0, 1, 0], [], []>} : vector<8x128xbf16>, vector<128x128xbf16>, vector<8x128xf32> -> vector<8x128xf32>
    %c0_3 = arith.constant 0 : index
    %c0_4 = arith.constant 0 : index
    %3 = vector.load %arg4[%c0_3, %c0_4] : memref<8x1xf32, #tpu.memory_space<vmem>>, vector<8x1xf32>
    %4 = vector.broadcast %3 : vector<8x1xf32> to vector<8x128xf32>
    %5 = arith.mulf %2, %4 : vector<8x128xf32>
    %c0_5 = arith.constant 0 : index
    %c0_6 = arith.constant 0 : index
    %6 = vector.load %arg5[%c0_5, %c0_6] : memref<1x128xf32, #tpu.memory_space<vmem>>, vector<1x128xf32>
    %7 = vector.broadcast %6 : vector<1x128xf32> to vector<8x128xf32>
    %8 = arith.mulf %5, %7 : vector<8x128xf32>
    %c0_7 = arith.constant 0 : index
    %c0_8 = arith.constant 0 : index
    %9 = vector.load %arg6[%c0_7, %c0_8] : memref<8x128xf32, #tpu.memory_space<vmem>>, vector<8x128xf32>
    tpu.vector_store %arg6[%c0_7, %c0_8], %8 {strides = array<i32>} : memref<8x128xf32, #tpu.memory_space<vmem>>, vector<8x128xf32>,
    return
  }
  func.func @transform_0(%arg0: i32, %arg1: i32) -> (i32, i32) {
    %c0_i32 = arith.constant 0 : i32
    %c0_i32_0 = arith.constant 0 : i32
    return %arg1, %c0_i32 : i32, i32
  }
  func.func @transform_1(%arg0: i32, %arg1: i32) -> (i32, i32) {
    %c0_i32 = arith.constant 0 : i32
    %c0_i32_0 = arith.constant 0 : i32
    return %arg0, %c0_i32 : i32, i32
  }
  func.func @transform_2(%arg0: i32, %arg1: i32) -> (i32, i32) {
    %c0_i32 = arith.constant 0 : i32
    %c0_i32_0 = arith.constant 0 : i32
    return %arg1, %c0_i32 : i32, i32
  }
  func.func @transform_3(%arg0: i32, %arg1: i32) -> (i32, i32) {
    %c0_i32 = arith.constant 0 : i32
    %c0_i32_0 = arith.constant 0 : i32
    return %c0_i32, %arg0 : i32, i32
  }
  func.func @transform_4(%arg0: i32, %arg1: i32) -> (i32, i32) {
    %c0_i32 = arith.constant 0 : i32
    return %arg1, %arg0 : i32, i32
  }
}

</mosaic_0001>

<bundles_post_ra>
// kernel: cosine_classifier.1
= control target key start
LH: loop header
LB: loop body
LE: loop exit
PB: predicated region body
PF: predicated region fallthrough
CT: control target
= control target key end

     0   :  { %s258_s0 = inlined_call_operand.vmem [shape: bf16[8,128], index: 0, kind: input, shape index: {}]   ;;  %s259_s1 = inlined_call_operand.vmem [shape: bf16[128,128], index: 1, kind: input, shape index: {}]   ;;  %s260_s2 = inlined_call_operand.vmem [shape: f32[8,1], index: 2, kind: input, shape index: {}]   ;;  %s261_s3 = inlined_call_operand.vmem [shape: f32[1,128], index: 3, kind: input, shape index: {}]   ;;  %s262_s4 = inlined_call_operand.hbm [shape: f32[8,128], index: 4, kind: output, shape index: {}]  }
   0x1   :  { %v164_v0 = vld [vmem:[%s259_s1 + $0x38] sm:$0xff] }
   0x2   :  { %83 = vmatpush.bf16.xpose.msra.mxu0 %v164_v0 }
   0x3   :  { %9 = vsyncpa [#allocation3], 0  ;;  %v163_v1 = vld [vmem:[%s259_s1 + $0x30] sm:$0xff]  ;;  %v162_v2 = vld [vmem:[%s259_s1 + $0x28] sm:$0xff]  ;;  %v195_v6 = vmov 0   ;;  %s196_s10 = smov [#allocation2]  }
   0x4   :  { %v161_v3 = vld [vmem:[%s259_s1 + $0x20] sm:$0xff]  ;;  %v160_v4 = vld [vmem:[%s259_s1 + $0x18] sm:$0xff]  ;;  %167 = vset.pattern.permute.xlu0 %v195_v6  ;;  %v159_v7 = vld [vmem:[%s259_s1 + $0x10] sm:$0xff]  ;;  %s114_s11 = sshll.u32 %s196_s10, 4  ;;  %s116_s14 = sshll.u32 %s262_s4, 4  ;;  %s115_s11 = int_to_ptr.vmem [resolvable:$true] %s114_s11  ;;  %s117_s14 = int_to_ptr.hbm [resolvable:$true] %s116_s14 }
   0x5   :  { %v96_v5 = vld [vmem:[%s260_s2] sm:$0xff]  ;;  %v158_v8 = vld [vmem:[%s259_s1 + $0x8] sm:$0xff] }
   0x6   :  { %99 = vperm.xlu0 %167, %v96_v5   ;;  %v157_v9 = vld [vmem:[%s259_s1] sm:$0xff] }
   0x7   :  { %v18_v10 = vld [vmem:[%s258_s0] sm:$0xf] }
   0x8   :  { %v168_v12 = vld [vmem:[%s261_s3] ss:$0 sm:$0xff] }
   0xa   :  { %84 = vmatpush.bf16.xpose.msra.mxu0 %v163_v1 }
  0x12   :  { %85 = vmatpush.bf16.xpose.msra.mxu0 %v162_v2 }
  0x1a   :  { %86 = vmatpush.bf16.xpose.msra.mxu0 %v161_v3 }
  0x22   :  { %87 = vmatpush.bf16.xpose.msra.mxu0 %v160_v4 }
  0x2a   :  { %88 = vmatpush.bf16.xpose.msra.mxu0 %v159_v7 }
  0x32   :  { %89 = vmatpush.bf16.xpose.msra.mxu0 %v158_v8 }
  0x3a   :  { %90 = vmatpush.bf16.xpose.msra.mxu0 %v157_v9 }
  0x41   :  { %91 = vmatmul.bf16.vlgmr.msra.gmra.mxu0 %v18_v10 }
  0x78   :  { %v100_v11 = vpop.permute.xlu0 %99 }
  0xbe   :  { %v92_v13 = vpop.f32.mrf.mxu0 }
  0xbf   :  { %v102_v14 = vmul.f32 %v100_v11, %v92_v13 }
  0xc1   :  { %v107_v15 = vmul.f32 %v168_v12, %v102_v14 }
  0xc3   :  { %108 = vst [vmem:[#allocation2] sm:$0xff] %v107_v15 }
  0xc4   :  { %119 = dma.vmem_to_hbm [thread:$0]  %s115_s11, 128, %s117_s14, [#allocation3]  }
  0xc6   :  { %v94_v16 = vpop.f32.mrf.mxu0 }
  0xc7   :  { %193 = dma.done.wait [#allocation3], 128  }
  0xc8   :  { %194 = vsyncadd [#allocation3], 4294967168 }
  0xc9   :  { %124 = vsyncpa [#allocation3], 1 }

</bundles_post_ra>
